<compile_context>
chip_gen: v5e
topology: v5e:2x2
jax: 0.10.0
libtpu: 0.0.40
codegen_flags: <defaults>
</compile_context>

<pallas_src>
import functools

import jax
import jax.numpy as jnp
from jax import lax
from jax.experimental import pallas as pl
from jax.experimental.pallas import tpu as pltpu


_LANE = 128
_TARGET_F32_TILE_BYTES = 6 << 20          # f32 working set per input tile
_VMEM_LIMIT_BYTES = 48 * 1024 * 1024      # safe on v7x (64 MiB physical)
_MAX_ROW_TILE = 2048


def _cdiv(a, b):
    return (a + b - 1) // b


def _round_up(a, b):
    return _cdiv(a, b) * b


def _pick_tiles(n, d, packing):
    """Choose (row_tile, d_tile) from the f32 working-set budget."""
    max_rows = max(1, _TARGET_F32_TILE_BYTES // max(d * 4, 1))
    # Row granularity: multiple of 128 when N allows (unmasked lane-dense
    # output stores); otherwise the dtype's sublane packing.
    gran = _LANE if n >= _LANE else max(8, packing)

    if max_rows >= gran:
        # Full-D rows fit the budget: 1-D grid over rows only.
        rt = min(max_rows, _MAX_ROW_TILE, _round_up(n, gran))
        rt = max(gran, (rt // gran) * gran)
        nt = _cdiv(n, rt)
        if nt >= 2 and nt % 2 == 1:
            # Nudge to an even tile count so v7x's two TensorCores get
            # balanced work; never force-split a single tile (that would be
            # pure per-step overhead on single-TC v5e/v6e).
            rt2 = _round_up(_cdiv(n, nt + 1), gran)
            if _cdiv(n, rt2) % 2 == 0:
                rt = rt2
        if rt >= n:
            rt = n            # a single full-array block is always legal
        return int(rt), int(d)

    # Large D: tile the feature axis too and accumulate per-row partial sums
    # in VMEM scratch.
    rt = min(gran, n)
    dt = max(_LANE, (_TARGET_F32_TILE_BYTES // (rt * 4)) // _LANE * _LANE)
    dt = min(dt, _round_up(d, _LANE))
    return int(rt), int(dt)


def _tanimoto_rows_kernel(x_ref, y_ref, o_ref, *, n, row_tile, mask_rows):
    """Whole-D rows per tile: one 'parallel' grid axis over rows."""
    # Cast to f32 inside the kernel (mirrors x.float()/y.float()); inputs stay
    # narrow in HBM so DMA bytes are minimized.
    x = x_ref[...].astype(jnp.float32)
    y = y_ref[...].astype(jnp.float32)

    if mask_rows:
        # Ragged last tile (read partially OOB): zero rows >= N before the
        # reductions; their 0 / 1e-8 = 0 outputs are sliced off in the wrapper.
        row = (lax.broadcasted_iota(jnp.int32, x.shape, 0)
               + pl.program_id(0) * row_tile)
        valid = row < n
        x = jnp.where(valid, x, 0.0)
        y = jnp.where(valid, y, 0.0)

    xy = x * y
    s = x + y - xy                       # VALU; saves a third cross-lane reduce
    num = jnp.sum(xy, axis=1)            # (row_tile,)
    den = jnp.sum(s, axis=1) + 1e-8      # (row_tile,)
    o_ref[0, :] = num / den              # lane-dense (1, row_tile) store


def _tanimoto_dtiled_kernel(x_ref, y_ref, o_ref, num_acc, den_acc, *,
                            n, d, row_tile, d_tile, mask_rows, mask_cols):
    """Large-D path: grid = (row tiles, feature tiles); the feature axis
    reduces into (row_tile, 1) VMEM accumulators."""
    k = pl.program_id(1)

    @pl.when(k == 0)
    def _init():
        num_acc[...] = jnp.zeros_like(num_acc)
        den_acc[...] = jnp.zeros_like(den_acc)

    x = x_ref[...].astype(jnp.float32)
    y = y_ref[...].astype(jnp.float32)

    valid = None
    if mask_rows:
        row = (lax.broadcasted_iota(jnp.int32, x.shape, 0)
               + pl.program_id(0) * row_tile)
        valid = row < n
    if mask_cols:
        col = lax.broadcasted_iota(jnp.int32, x.shape, 1) + k * d_tile
        cvalid = col < d
        valid = cvalid if valid is None else (valid & cvalid)
    if valid is not None:
        x = jnp.where(valid, x, 0.0)   # zeros contribute nothing to either sum
        y = jnp.where(valid, y, 0.0)

    xy = x * y
    s = x + y - xy
    num_acc[...] += jnp.sum(xy, axis=1, keepdims=True)
    den_acc[...] += jnp.sum(s, axis=1, keepdims=True)

    @pl.when(k == pl.num_programs(1) - 1)
    def _finalize():
        res = num_acc[...] / (den_acc[...] + 1e-8)   # (row_tile, 1)
        o_ref[0, :] = res[:, 0]


def tanimoto_kernel(x, y, *, row_tile=None, d_tile=None):
    """Row-wise Tanimoto similarity: (N, D), (N, D) -> (N,), float32.

    Pass fingerprints in their native dtype (f32 / bf16 / int8); the f32 cast
    (torch's .float()) happens inside the kernel so HBM traffic stays narrow.
    """
    assert x.shape == y.shape and x.ndim == 2
    n, d = x.shape

    itemsize = min(jnp.dtype(x.dtype).itemsize, jnp.dtype(y.dtype).itemsize)
    packing = max(8, 32 // max(itemsize, 1))      # f32 -> 8, bf16 -> 16, int8 -> 32

    auto_rt, auto_dt = _pick_tiles(n, d, packing)
    rt = auto_rt if row_tile is None else int(row_tile)
    dt = auto_dt if d_tile is None else int(d_tile)

    if row_tile is not None:
        if rt >= n:
            rt = n                                 # full-dim block is always legal
        else:
            rt = max(packing, (rt // packing) * packing)
    if d_tile is not None and dt < d:
        dt = max(_LANE, (dt // _LANE) * _LANE)

    num_row_tiles = _cdiv(n, rt)
    mask_rows = (n % rt) != 0

    if dt >= d:
        kernel = functools.partial(
            _tanimoto_rows_kernel, n=n, row_tile=rt, mask_rows=mask_rows)
        grid = (num_row_tiles,)
        in_specs = [pl.BlockSpec((rt, d), lambda i: (i, 0)),
                    pl.BlockSpec((rt, d), lambda i: (i, 0))]
        out_specs = pl.BlockSpec((1, rt), lambda i: (i, 0))
        scratch_shapes = []
        dim_sem = ("parallel",)
    else:
        num_d_tiles = _cdiv(d, dt)
        mask_cols = (d % dt) != 0
        kernel = functools.partial(
            _tanimoto_dtiled_kernel, n=n, d=d, row_tile=rt, d_tile=dt,
            mask_rows=mask_rows, mask_cols=mask_cols)
        grid = (num_row_tiles, num_d_tiles)        # reduction axis last
        in_specs = [pl.BlockSpec((rt, dt), lambda i, k: (i, k)),
                    pl.BlockSpec((rt, dt), lambda i, k: (i, k))]
        out_specs = pl.BlockSpec((1, rt), lambda i, k: (i, 0))
        scratch_shapes = [pltpu.VMEM((rt, 1), jnp.float32),
                          pltpu.VMEM((rt, 1), jnp.float32)]
        dim_sem = ("parallel", "arbitrary")

    out2d = pl.pallas_call(
        kernel,
        out_shape=jax.ShapeDtypeStruct((num_row_tiles, rt), jnp.float32),
        grid_spec=pltpu.PrefetchScalarGridSpec(
            num_scalar_prefetch=0,
            grid=grid,
            in_specs=in_specs,
            out_specs=out_specs,
            scratch_shapes=scratch_shapes,
        ),
        compiler_params=pltpu.CompilerParams(
            dimension_semantics=dim_sem,
            vmem_limit_bytes=_VMEM_LIMIT_BYTES,
        ),
    )(x, y)

    return out2d.reshape(num_row_tiles * rt)[:n]   # (N,), matches torch .sum(dim=1)


def _reference(x, y):
    x = x.astype(jnp.float32)
    y = y.astype(jnp.float32)
    num = jnp.sum(x * y, axis=1)
    den = jnp.sum(x + y - x * y, axis=1) + 1e-8
    return num / den


if __name__ == "__main__":
    key = jax.random.PRNGKey(0)
    keys = jax.random.split(key, 8)

    # Test 1: float32, single full block.
    x1 = jax.random.uniform(keys[0], (16, 128), dtype=jnp.float32)
    y1 = jax.random.uniform(keys[1], (16, 128), dtype=jnp.float32)
    out1 = jax.block_until_ready(tanimoto_kernel(x1, y1))
    assert out1.shape == (16,)
    assert jnp.allclose(out1, _reference(x1, y1), rtol=1e-5, atol=1e-6), "f32 mismatch"

    # Test 2: bf16 inputs kept narrow in HBM (upcast to f32 inside the kernel).
    x2 = jax.random.uniform(keys[2], (24, 64), dtype=jnp.float32).astype(jnp.bfloat16)
    y2 = jax.random.uniform(keys[3], (24, 64), dtype=jnp.float32).astype(jnp.bfloat16)
    out2 = jax.block_until_ready(tanimoto_kernel(x2, y2))
    assert out2.shape == (24,)
    assert jnp.allclose(out2, _reference(x2, y2), rtol=1e-5, atol=1e-6), "bf16 mismatch"

    # Test 3: ragged rows (N % row_tile != 0) -- exercises the in-kernel
    # tail-row masking that replaced the jnp.pad HBM round-trip.
    x3 = jax.random.uniform(keys[4], (200, 32), dtype=jnp.float32)
    y3 = jax.random.uniform(keys[5], (200, 32), dtype=jnp.float32)
    out3 = jax.block_until_ready(tanimoto_kernel(x3, y3, row_tile=128))
    assert out3.shape == (200,)
    assert jnp.allclose(out3, _reference(x3, y3), rtol=1e-5, atol=1e-6), "ragged-row mismatch"

    # Test 4: feature-tiled (large-D) path with ragged rows AND ragged columns,
    # forced via small explicit tiles so it runs at small shapes.
    x4 = jax.random.uniform(keys[6], (40, 300), dtype=jnp.float32)
    y4 = jax.random.uniform(keys[7], (40, 300), dtype=jnp.float32)
    out4 = jax.block_until_ready(tanimoto_kernel(x4, y4, row_tile=32, d_tile=128))
    assert out4.shape == (40,)
    assert jnp.allclose(out4, _reference(x4, y4), rtol=1e-5, atol=1e-6), "d-tiled mismatch"

    print("KERNEL_OK")
</pallas_src>

<mosaic_0001>
module attributes {stable_mosaic.version = 11 : i64} {
  func.func @_tanimoto_rows_kernel(%arg0: i32, %arg1: memref<16x128xf32, #tpu.memory_space<vmem>>, %arg2: memref<16x128xf32, #tpu.memory_space<vmem>>, %arg3: memref<1x16xf32, #tpu.memory_space<vmem>>) attributes {dimension_semantics = [#tpu.dimension_semantics<parallel>], iteration_bounds = array<i64: 1>, scalar_prefetch = 0 : i64, scratch_operands = 0 : i64, tpu.core_type = #tpu.core_type<tc>, window_params = [{transform_indices = @transform_0, window_bounds = array<i64: 16, 128>}, {transform_indices = @transform_1, window_bounds = array<i64: 16, 128>}, {transform_indices = @transform_2, window_bounds = array<i64: 1, 16>}]} {
    %c0 = arith.constant 0 : index
    %c0_0 = arith.constant 0 : index
    %0 = vector.load %arg1[%c0, %c0_0] : memref<16x128xf32, #tpu.memory_space<vmem>>, vector<16x128xf32>
    %c0_1 = arith.constant 0 : index
    %c0_2 = arith.constant 0 : index
    %1 = vector.load %arg2[%c0_1, %c0_2] : memref<16x128xf32, #tpu.memory_space<vmem>>, vector<16x128xf32>
    %2 = arith.mulf %0, %1 : vector<16x128xf32>
    %3 = arith.addf %0, %1 : vector<16x128xf32>
    %4 = arith.subf %3, %2 : vector<16x128xf32>
    %cst = arith.constant dense<0.000000e+00> : vector<16xf32>
    %5 = vector.multi_reduction <add>, %2, %cst [1] : vector<16x128xf32> to vector<16xf32>
    %cst_3 = arith.constant dense<0.000000e+00> : vector<16xf32>
    %6 = vector.multi_reduction <add>, %4, %cst_3 [1] : vector<16x128xf32> to vector<16xf32>
    %cst_4 = arith.constant 9.99999993E-9 : f32
    %7 = vector.broadcast %cst_4 : f32 to vector<16xf32>
    %8 = arith.addf %6, %7 : vector<16xf32>
    %9 = arith.divf %5, %8 : vector<16xf32>
    %c0_5 = arith.constant 0 : index
    %c0_6 = arith.constant 0 : index
    %10 = vector.load %arg3[%c0_5, %c0_6] : memref<1x16xf32, #tpu.memory_space<vmem>>, vector<1x16xf32>
    %11 = vector.shape_cast %10 : vector<1x16xf32> to vector<16xf32>
    %12 = vector.shape_cast %9 : vector<16xf32> to vector<1x16xf32>
    tpu.vector_store %arg3[%c0_5, %c0_6], %12 {strides = array<i32>} : memref<1x16xf32, #tpu.memory_space<vmem>>, vector<1x16xf32>,
    return
  }
  func.func @transform_0(%arg0: i32) -> (i32, i32) {
    %c0_i32 = arith.constant 0 : i32
    %c0_i32_0 = arith.constant 0 : i32
    return %arg0, %c0_i32 : i32, i32
  }
  func.func @transform_1(%arg0: i32) -> (i32, i32) {
    %c0_i32 = arith.constant 0 : i32
    %c0_i32_0 = arith.constant 0 : i32
    return %arg0, %c0_i32 : i32, i32
  }
  func.func @transform_2(%arg0: i32) -> (i32, i32) {
    %c0_i32 = arith.constant 0 : i32
    %c0_i32_0 = arith.constant 0 : i32
    return %arg0, %c0_i32 : i32, i32
  }
}

</mosaic_0001>

<bundles_post_ra>
// kernel: tpu_custom_call.1
= control target key start
LH: loop header
LB: loop body
LE: loop exit
PB: predicated region body
PF: predicated region fallthrough
CT: control target
= control target key end

     0   :  { %7 = vsyncpa [#allocation3], 0  ;;  %s240_s0 = inlined_call_operand.hbm [shape: f32[16,128], index: 0, kind: input, shape index: {}]   ;;  %s241_s1 = inlined_call_operand.hbm [shape: f32[16,128], index: 1, kind: input, shape index: {}]   ;;  %s242_s2 = inlined_call_operand.hbm [shape: f32[1,16], index: 2, kind: output, shape index: {}]  }
   0x1   :  { %8 = vsyncpa [#allocation6], 0 }
   0x2   :  { %9 = vsyncpa [#allocation4], 0  ;;  %s14_s11 = sshll.u32 %s240_s0, 4  ;;  %s211_s12 = smov [#allocation2]   ;;  %s15_s11 = int_to_ptr.hbm [resolvable:$true] %s14_s11 }
   0x3   :  { %s16_s13 = sshll.u32 %s211_s12, 4  ;;  %s27_s16 = sshll.u32 %s241_s1, 4  ;;  %s17_s13 = int_to_ptr.vmem [resolvable:$true] %s16_s13  ;;  %s28_s16 = int_to_ptr.hbm [resolvable:$true] %s27_s16 }
   0x4   :  { %s212_s17 = smov 128   ;;  %s213_s18 = smov 8  }
   0x5   :  { %22 = dma.hbm_to_vmem [thread:$0]  %s15_s11, 256, %s17_s13, [#allocation3], %s212_s17, %s212_s17, %s213_s18  }
   0x6   :  { %s214_s19 = smov [#allocation5]  }
   0x7   :  { %s29_s20 = sshll.u32 %s214_s19, 4  ;;  %s30_s20 = int_to_ptr.vmem [resolvable:$true] %s29_s20 }
   0x8   :  { %35 = dma.hbm_to_vmem [thread:$0]  %s28_s16, 256, %s30_s20, [#allocation6], %s212_s17, %s212_s17, %s213_s18  }
   0x9   :  { %205 = dma.done.wait [#allocation3], 256  }
   0xa   :  { %206 = vsyncadd [#allocation3], 4294967040 }
   0xb   :  { %207 = dma.done.wait [#allocation6], 256  }
   0xc   :  { %208 = vsyncadd [#allocation6], 4294967040  ;;  %v44_v0 = vld [vmem:[#allocation2] sm:$0xff]  ;;  %v46_v1 = vld [vmem:[#allocation5] sm:$0xff]  ;;  %v96_v24 = vlaneseq  ;;  %s215_s0 = smov [#allocation7]   ;;  %s113_s23 = sshll.u32 %s242_s2, 4  ;;  %s114_s23 = int_to_ptr.hbm [resolvable:$true] %s113_s23 }
   0xd   :  { %v48_v2 = vmul.f32 %v46_v1, %v44_v0  ;;  %v50_v3 = vadd.f32 %v46_v1, %v44_v0  ;;  %v45_v4 = vld [vmem:[#allocation2 + $0x8] sm:$0xff]  ;;  %v47_v5 = vld [vmem:[#allocation5 + $0x8] sm:$0xff]  ;;  %s111_s1 = sshll.u32 %s215_s0, 4  ;;  %vm101_vm8 = vcmask 130112   ;;  %vm104_vm9 = vcmask 122880   ;;  %s112_s1 = int_to_ptr.vmem [resolvable:$true] %s111_s1 }
   0xe   :  { %v49_v7 = vmul.f32 %v47_v5, %v45_v4  ;;  %v51_v8 = vadd.f32 %v47_v5, %v45_v4  ;;  %v97_v32 = vand.u32 127, %v96_v24 }
   0xf   :  { %v52_v6 = vsub.f32 %v50_v3, %v48_v2  ;;  %54 = vadd.xlane.f32.xlu1 %v48_v2 }
  0x10   :  { %v53_v9 = vsub.f32 %v51_v8, %v49_v7  ;;  %v99_v37 = vadd.s32 4294967288, %v97_v32 }
  0x11   :  { %58 = vadd.xlane.f32.xlu0 %v52_v6 }
  0x17   :  { %56 = vadd.xlane.f32.xlu1 %v49_v7 }
  0x19   :  { %60 = vadd.xlane.f32.xlu0 %v53_v9 }
  0x82   :  { %v55_v18 = vpop.xlane.xlu1 %54 }
  0x84   :  { %v59_v10 = vpop.xlane.xlu0 %58 }
  0x85   :  { %v62_v11 = vadd.f32 1e-08, %v59_v10 }
  0x87   :  { %129 = vrcp.f32 %v62_v11  ;;  %v75_v21 = vand.u32 2147483648, %v62_v11  ;;  %vm69_vm1 = vweird.f32 %v62_v11  ;;  %v73_v23 = vand.u32 2147483647, %v62_v11 }
  0x89   :  { %v76_v27 = vor.u32 1.1754944e-38, %v75_v21  ;;  %vm74_vm3 = vcmp.eq.f32.partialorder %v73_v23, 8.507059e+37 }
  0x8a   :  { %v57_v34 = vpop.xlane.xlu1 %56 }
  0x8c   :  { %v61_v12 = vpop.xlane.xlu0 %60 }
  0x8d   :  { %v130_v13 = vpop.eup %129  ;;  %v63_v14 = vadd.f32 1e-08, %v61_v12 }
  0x8e   :  { %v65_v15 = vmul.f32 %v130_v13, %v62_v11  ;;  %vm70_vm0 = vweird.f32 %v130_v13 }
  0x8f   :  { %131 = vrcp.f32 %v63_v14  ;;  %vm71_vm2 = vmor %vm69_vm1, %vm70_vm0  ;;  %v90_v28 = vand.u32 2147483648, %v63_v14  ;;  %v88_v30 = vand.u32 2147483647, %v63_v14  ;;  %vm84_vm5 = vweird.f32 %v63_v14 }
  0x90   :  { %v66_v16 = vsub.f32 1.0, %v65_v15 }
  0x91   :  { %v91_v35 = vor.u32 1.1754944e-38, %v90_v28  ;;  %vm89_vm7 = vcmp.eq.f32.partialorder %v88_v30, 8.507059e+37 }
  0x92   :  { %v67_v17 = vmul.f32 %v130_v13, %v66_v16 }
  0x94   :  { %v68_v19 = vadd.f32 %v130_v13, %v67_v17 }
  0x95   :  { %v132_v20 = vpop.eup %131 }
  0x96   :  { %v80_v22 = vmul.f32 %v132_v20, %v63_v14  ;;  %v72_v25 = vsel %vm71_vm2, %v130_v13, %v68_v19  ;;  %vm85_vm4 = vweird.f32 %v132_v20 }
  0x97   :  { %v77_v31 = vsel %vm74_vm3, %v76_v27, %v72_v25  ;;  %vm86_vm6 = vmor %vm84_vm5, %vm85_vm4 }
  0x98   :  { %v81_v26 = vsub.f32 1.0, %v80_v22  ;;  %v78_v36 = vmul.f32 %v77_v31, %v55_v18 }
  0x9a   :  { %v82_v29 = vmul.f32 %v132_v20, %v81_v26  ;;  %v98_v41 = vperm.slane %v78_v36, %v97_v32 }
  0x9c   :  { %v83_v33 = vadd.f32 %v132_v20, %v82_v29 }
  0x9e   :  { %v87_v38 = vsel %vm86_vm6, %v132_v20, %v83_v33 }
  0x9f   :  { %v92_v39 = vsel %vm89_vm7, %v91_v35, %v87_v38 }
  0xa0   :  { %v93_v40 = vmul.f32 %v92_v39, %v57_v34 }
  0xa2   :  { %v100_v42 = vperm.slane %v93_v40, %v99_v37 }
  0xa4   :  { %v102_v43 = vsel %vm101_vm8, %v100_v42, %v98_v41 }
  0xa5   :  { %105 = vst.msk [vmem:[#allocation7] sm:$0x1] %vm104_vm9, %v102_v43 }
  0xa6   :  { %116 = dma.vmem_to_hbm [thread:$0]  %s112_s1, 16, %s114_s23, [#allocation4]  }
  0xa7   :  { %209 = dma.done.wait [#allocation4], 16  }
  0xa8   :  { %210 = vsyncadd [#allocation4], 4294967280 }
  0xa9   :  { %121 = vsyncpa [#allocation3], 1 }
  0xaa   :  { %122 = vsyncpa [#allocation6], 1 }
  0xab   :  { %123 = vsyncpa [#allocation4], 1 }

</bundles_post_ra>
